<compile_context>
chip_gen: v5e
topology: v5e:2x2
jax: 0.10.0
libtpu: 0.0.40
codegen_flags: <defaults>
</compile_context>

<pallas_src>
import functools

import jax
import jax.numpy as jnp
from jax.experimental import pallas as pl
from jax.experimental.pallas import tpu as pltpu


# --------------------------------------------------------------------------- #
# Kernels
# --------------------------------------------------------------------------- #
def _relu_conv_same_kernel(x_ref, w_ref, mask_ref, o_ref, stats_ref, *,
                           kh, kw, pad, img_w):
    """ReLU + 'same' conv (stride=1, 2*pad == k-1) for one batch element.

    x_ref:     (1, C_in, H*W)       flattened, UNPADDED input (lane axis = H*W)
    w_ref:     (C_out, kh*kw*C_in)  weights as one im2col matrix
    mask_ref:  (kh*kw, H*W)         0/1 border masks (implements zero padding)
    o_ref:     (1, C_out, H*W)      lane-dense conv output (f32)
    stats_ref: (1, C_out, 2)        per-channel [sum, sum_of_squares] for BN
    """
    x = jnp.maximum(x_ref[0].astype(jnp.float32), 0.0)           # ReLU on the VPU
    m = x.shape[-1]

    # im2col via static lane rolls: for tap (i, j) the contributing input pixel of
    # output pixel p is p + d with d = (i-pad)*W + (j-pad); out-of-image (padding)
    # pixels are zeroed by the precomputed mask, so the circular wrap is harmless.
    taps = []
    for i in range(kh):
        for j in range(kw):
            d = (i - pad) * img_w + (j - pad)
            shift = (-d) % m
            shifted = pltpu.roll(x, shift, axis=1) if shift else x
            t = i * kw + j
            taps.append(shifted * mask_ref[t:t + 1, :])
    col = jnp.concatenate(taps, axis=0)                           # (kh*kw*C_in, M)

    # Single MXU contraction over K = kh*kw*C_in (instead of kh*kw dots with K=C_in).
    y = jnp.dot(w_ref[...], col, preferred_element_type=jnp.float32)  # (C_out, M)

    o_ref[0] = y
    stats_ref[0] = jnp.concatenate(
        [jnp.sum(y, axis=1, keepdims=True),
         jnp.sum(y * y, axis=1, keepdims=True)], axis=1)          # (C_out, 2)


def _relu_conv_general_kernel(x_ref, w_ref, o_ref, stats_ref, *,
                              kh, kw, stride, h_out, w_out):
    """General path (stride != 1 or non-'same' padding): per-tap strided slices.

    x_ref: (1, H_pad, W_pad, C_in) zero-padded NHWC input
    w_ref: (kh, kw, C_in, C_out)
    o_ref: (1, C_out, H_out*W_out);  stats_ref: (1, C_out, 2)
    """
    # TODO(synk): less optimized than the 'same'-conv fast path (per-tap reshapes and
    #             a final transpose); only used for strided / valid instantiations.
    x = jnp.maximum(x_ref[0].astype(jnp.float32), 0.0)
    c_in = x.shape[-1]
    c_out = w_ref.shape[-1]
    m = h_out * w_out
    acc = jnp.zeros((m, c_out), jnp.float32)
    for i in range(kh):
        for j in range(kw):
            patch = x[i: i + (h_out - 1) * stride + 1: stride,
                      j: j + (w_out - 1) * stride + 1: stride, :]
            acc = acc + jnp.dot(patch.reshape(m, c_in), w_ref[i, j],
                                preferred_element_type=jnp.float32)
    y = acc.T                                                     # (C_out, M) lane-dense
    o_ref[0] = y
    stats_ref[0] = jnp.concatenate(
        [jnp.sum(y, axis=1, keepdims=True),
         jnp.sum(y * y, axis=1, keepdims=True)], axis=1)


def _bn_apply_kernel(y_ref, scale_ref, shift_ref, o_ref):
    """y * scale + shift with per-channel scale/shift, lane-dense over H*W.

    y_ref: (1, C_out, M) f32; scale_ref/shift_ref: (C_out, 1); o_ref: (1, C_out, M)
    """
    o_ref[0] = (y_ref[0] * scale_ref[...] + shift_ref[...]).astype(o_ref.dtype)


# --------------------------------------------------------------------------- #
# Wrapper
# --------------------------------------------------------------------------- #
def relu_conv_bn(x_nchw, w_oihw, gamma, beta, *, stride, padding, eps=1e-5):
    """Forward pass of ReLUConvBN. Input/output are NCHW (PyTorch convention)."""
    n, c_in, h, w = x_nchw.shape
    c_out, _, kh, kw = w_oihw.shape
    h_out = (h + 2 * padding - kh) // stride + 1
    w_out = (w + 2 * padding - kw) // stride + 1
    m = h_out * w_out

    out_shapes = (jax.ShapeDtypeStruct((n, c_out, m), jnp.float32),   # conv output
                  jax.ShapeDtypeStruct((n, c_out, 2), jnp.float32))   # BN stats
    conv_out_spec = pl.BlockSpec((1, c_out, m), lambda i: (i, 0, 0))
    stats_spec = pl.BlockSpec((1, c_out, 2), lambda i: (i, 0, 0))
    params = pltpu.CompilerParams(dimension_semantics=("parallel",))

    same_conv = (stride == 1 and 2 * padding == kh - 1 and 2 * padding == kw - 1)
    if same_conv:
        # Fast path: no pad / no transposes; these reshapes are free (contiguous).
        x_flat = x_nchw.reshape(n, c_in, h * w)
        w_mat = jnp.transpose(w_oihw, (0, 2, 3, 1)).reshape(c_out, kh * kw * c_in)

        # Per-tap border masks (tiny: kh*kw x H*W), computed once on device.
        pos = jnp.arange(h * w, dtype=jnp.int32)
        row, col = pos // w, pos % w
        masks = []
        for i in range(kh):
            for j in range(kw):
                dy, dx = i - padding, j - padding
                masks.append((row + dy >= 0) & (row + dy < h) &
                             (col + dx >= 0) & (col + dx < w))
        mask_arr = jnp.stack(masks, axis=0).astype(jnp.float32)   # (kh*kw, H*W)

        conv_y, stats = pl.pallas_call(
            functools.partial(_relu_conv_same_kernel, kh=kh, kw=kw,
                              pad=padding, img_w=w),
            out_shape=out_shapes,
            grid=(n,),
            in_specs=[
                pl.BlockSpec((1, c_in, h * w), lambda i: (i, 0, 0)),
                pl.BlockSpec((c_out, kh * kw * c_in), lambda i: (0, 0)),
                pl.BlockSpec((kh * kw, h * w), lambda i: (0, 0)),
            ],
            out_specs=(conv_out_spec, stats_spec),
            compiler_params=params,
        )(x_flat, w_mat, mask_arr)
    else:
        x_nhwc = jnp.transpose(x_nchw, (0, 2, 3, 1))
        x_pad = jnp.pad(x_nhwc, ((0, 0), (padding, padding),
                                 (padding, padding), (0, 0)))
        w_hwio = jnp.transpose(w_oihw, (2, 3, 1, 0))
        h_pad, w_pad = h + 2 * padding, w + 2 * padding

        conv_y, stats = pl.pallas_call(
            functools.partial(_relu_conv_general_kernel, kh=kh, kw=kw,
                              stride=stride, h_out=h_out, w_out=w_out),
            out_shape=out_shapes,
            grid=(n,),
            in_specs=[
                pl.BlockSpec((1, h_pad, w_pad, c_in), lambda i: (i, 0, 0, 0)),
                pl.BlockSpec((kh, kw, c_in, c_out), lambda i: (0, 0, 0, 0)),
            ],
            out_specs=(conv_out_spec, stats_spec),
            compiler_params=params,
        )(x_pad, w_hwio)

    # Tiny (N, C_out, 2) -> (C_out,) reduction and scale/shift: negligible XLA glue.
    g32 = gamma.astype(jnp.float32)
    b32 = beta.astype(jnp.float32)
    count = jnp.float32(n * m)
    s = jnp.sum(stats, axis=0)                               # (C_out, 2)
    mean = s[:, 0] / count
    var = jnp.maximum(s[:, 1] / count - mean * mean, 0.0)    # biased variance
    inv = jax.lax.rsqrt(var + eps)
    scale = (g32 * inv).reshape(c_out, 1)
    shift = (b32 - mean * g32 * inv).reshape(c_out, 1)

    y = pl.pallas_call(
        _bn_apply_kernel,
        out_shape=jax.ShapeDtypeStruct((n, c_out, m), x_nchw.dtype),
        grid=(n,),
        in_specs=[
            pl.BlockSpec((1, c_out, m), lambda i: (i, 0, 0)),
            pl.BlockSpec((c_out, 1), lambda i: (0, 0)),
            pl.BlockSpec((c_out, 1), lambda i: (0, 0)),
        ],
        out_specs=pl.BlockSpec((1, c_out, m), lambda i: (i, 0, 0)),
        compiler_params=params,
    )(conv_y, scale, shift)

    return y.reshape(n, c_out, h_out, w_out)                 # NCHW, no transpose


# --------------------------------------------------------------------------- #
# Reference + self-check
# --------------------------------------------------------------------------- #
def reference_relu_conv_bn(x, w, gamma, beta, *, stride, padding, eps=1e-5):
    xr = jnp.maximum(x, 0.0)
    y = jax.lax.conv_general_dilated(
        xr, w, window_strides=(stride, stride),
        padding=[(padding, padding), (padding, padding)],
        dimension_numbers=("NCHW", "OIHW", "NCHW"))
    mean = jnp.mean(y, axis=(0, 2, 3), keepdims=True)
    var = jnp.mean((y - mean) ** 2, axis=(0, 2, 3), keepdims=True)
    return ((y - mean) / jnp.sqrt(var + eps)) * gamma.reshape(1, -1, 1, 1) \
        + beta.reshape(1, -1, 1, 1)


if __name__ == "__main__":
    # Module config: ReLUConvBN(C_in=4, C_out=8, kernel_size=3, stride=1, padding=1)
    N, C_IN, C_OUT, H, W = 2, 4, 8, 16, 16
    KH = KW = 3
    STRIDE, PAD = 1, 1

    key = jax.random.PRNGKey(0)
    kx, kw_, kg, kb = jax.random.split(key, 4)
    x = jax.random.normal(kx, (N, C_IN, H, W), jnp.float32)
    conv_w = jax.random.normal(kw_, (C_OUT, C_IN, KH, KW), jnp.float32) * 0.1
    gamma = 1.0 + 0.1 * jax.random.normal(kg, (C_OUT,), jnp.float32)
    beta = 0.1 * jax.random.normal(kb, (C_OUT,), jnp.float32)

    out = relu_conv_bn(x, conv_w, gamma, beta, stride=STRIDE, padding=PAD)
    out = jax.block_until_ready(out)

    ref = reference_relu_conv_bn(x, conv_w, gamma, beta, stride=STRIDE, padding=PAD)
    assert out.shape == (N, C_OUT, H, W), out.shape
    assert jnp.allclose(out, ref, atol=1e-4, rtol=1e-4), \
        float(jnp.max(jnp.abs(out - ref)))

    print("KERNEL_OK")
</pallas_src>

<mosaic_0001>
module attributes {stable_mosaic.version = 11 : i64} {
  func.func @_relu_conv_same_kernel(%arg0: i32, %arg1: memref<1x4x256xf32, #tpu.memory_space<vmem>>, %arg2: memref<8x36xf32, #tpu.memory_space<vmem>>, %arg3: memref<9x256xf32, #tpu.memory_space<vmem>>, %arg4: memref<1x8x256xf32, #tpu.memory_space<vmem>>, %arg5: memref<1x8x2xf32, #tpu.memory_space<vmem>>) attributes {dimension_semantics = [#tpu.dimension_semantics<parallel>], iteration_bounds = array<i64: 2>, scalar_prefetch = 0 : i64, scratch_operands = 0 : i64, tpu.core_type = #tpu.core_type<tc>, window_params = [{transform_indices = @transform_0, window_bounds = array<i64: 1, 4, 256>}, {pipeline_mode = #tpu.pipeline_mode<synchronous>, transform_indices = @transform_1, window_bounds = array<i64: 8, 36>}, {pipeline_mode = #tpu.pipeline_mode<synchronous>, transform_indices = @transform_2, window_bounds = array<i64: 9, 256>}, {transform_indices = @transform_3, window_bounds = array<i64: 1, 8, 256>}, {transform_indices = @transform_4, window_bounds = array<i64: 1, 8, 2>}]} {
    %c0 = arith.constant 0 : index
    %c0_0 = arith.constant 0 : index
    %c0_1 = arith.constant 0 : index
    %0 = vector.load %arg1[%c0, %c0_0, %c0_1] : memref<1x4x256xf32, #tpu.memory_space<vmem>>, vector<1x4x256xf32>
    %1 = vector.shape_cast %0 : vector<1x4x256xf32> to vector<4x256xf32>
    %cst = arith.constant 0.000000e+00 : f32
    %2 = vector.broadcast %cst : f32 to vector<4x256xf32>
    %3 = arith.maximumf %1, %2 : vector<4x256xf32>
    %c17_i32 = arith.constant 17 : i32
    %4 = tpu.dynamic_rotate %3 by %c17_i32 dim 1 : vector<4x256xf32>, i32 -> vector<4x256xf32>
    %c0_2 = arith.constant 0 : index
    %c0_3 = arith.constant 0 : index
    %5 = vector.load %arg3[%c0_2, %c0_3] : memref<9x256xf32, #tpu.memory_space<vmem>>, vector<1x256xf32>
    %6 = vector.broadcast %5 : vector<1x256xf32> to vector<4x256xf32>
    %7 = arith.mulf %4, %6 : vector<4x256xf32>
    %c16_i32 = arith.constant 16 : i32
    %8 = tpu.dynamic_rotate %3 by %c16_i32 dim 1 : vector<4x256xf32>, i32 -> vector<4x256xf32>
    %c1 = arith.constant 1 : index
    %c0_4 = arith.constant 0 : index
    %9 = vector.load %arg3[%c1, %c0_4] : memref<9x256xf32, #tpu.memory_space<vmem>>, vector<1x256xf32>
    %10 = vector.broadcast %9 : vector<1x256xf32> to vector<4x256xf32>
    %11 = arith.mulf %8, %10 : vector<4x256xf32>
    %c15_i32 = arith.constant 15 : i32
    %12 = tpu.dynamic_rotate %3 by %c15_i32 dim 1 : vector<4x256xf32>, i32 -> vector<4x256xf32>
    %c2 = arith.constant 2 : index
    %c0_5 = arith.constant 0 : index
    %13 = vector.load %arg3[%c2, %c0_5] : memref<9x256xf32, #tpu.memory_space<vmem>>, vector<1x256xf32>
    %14 = vector.broadcast %13 : vector<1x256xf32> to vector<4x256xf32>
    %15 = arith.mulf %12, %14 : vector<4x256xf32>
    %c1_i32 = arith.constant 1 : i32
    %16 = tpu.dynamic_rotate %3 by %c1_i32 dim 1 : vector<4x256xf32>, i32 -> vector<4x256xf32>
    %c3 = arith.constant 3 : index
    %c0_6 = arith.constant 0 : index
    %17 = vector.load %arg3[%c3, %c0_6] : memref<9x256xf32, #tpu.memory_space<vmem>>, vector<1x256xf32>
    %18 = vector.broadcast %17 : vector<1x256xf32> to vector<4x256xf32>
    %19 = arith.mulf %16, %18 : vector<4x256xf32>
    %c4 = arith.constant 4 : index
    %c0_7 = arith.constant 0 : index
    %20 = vector.load %arg3[%c4, %c0_7] : memref<9x256xf32, #tpu.memory_space<vmem>>, vector<1x256xf32>
    %21 = vector.broadcast %20 : vector<1x256xf32> to vector<4x256xf32>
    %22 = arith.mulf %3, %21 : vector<4x256xf32>
    %c255_i32 = arith.constant 255 : i32
    %23 = tpu.dynamic_rotate %3 by %c255_i32 dim 1 : vector<4x256xf32>, i32 -> vector<4x256xf32>
    %c5 = arith.constant 5 : index
    %c0_8 = arith.constant 0 : index
    %24 = vector.load %arg3[%c5, %c0_8] : memref<9x256xf32, #tpu.memory_space<vmem>>, vector<1x256xf32>
    %25 = vector.broadcast %24 : vector<1x256xf32> to vector<4x256xf32>
    %26 = arith.mulf %23, %25 : vector<4x256xf32>
    %c241_i32 = arith.constant 241 : i32
    %27 = tpu.dynamic_rotate %3 by %c241_i32 dim 1 : vector<4x256xf32>, i32 -> vector<4x256xf32>
    %c6 = arith.constant 6 : index
    %c0_9 = arith.constant 0 : index
    %28 = vector.load %arg3[%c6, %c0_9] : memref<9x256xf32, #tpu.memory_space<vmem>>, vector<1x256xf32>
    %29 = vector.broadcast %28 : vector<1x256xf32> to vector<4x256xf32>
    %30 = arith.mulf %27, %29 : vector<4x256xf32>
    %c240_i32 = arith.constant 240 : i32
    %31 = tpu.dynamic_rotate %3 by %c240_i32 dim 1 : vector<4x256xf32>, i32 -> vector<4x256xf32>
    %c7 = arith.constant 7 : index
    %c0_10 = arith.constant 0 : index
    %32 = vector.load %arg3[%c7, %c0_10] : memref<9x256xf32, #tpu.memory_space<vmem>>, vector<1x256xf32>
    %33 = vector.broadcast %32 : vector<1x256xf32> to vector<4x256xf32>
    %34 = arith.mulf %31, %33 : vector<4x256xf32>
    %c239_i32 = arith.constant 239 : i32
    %35 = tpu.dynamic_rotate %3 by %c239_i32 dim 1 : vector<4x256xf32>, i32 -> vector<4x256xf32>
    %c8 = arith.constant 8 : index
    %c0_11 = arith.constant 0 : index
    %36 = vector.load %arg3[%c8, %c0_11] : memref<9x256xf32, #tpu.memory_space<vmem>>, vector<1x256xf32>
    %37 = vector.broadcast %36 : vector<1x256xf32> to vector<4x256xf32>
    %38 = arith.mulf %35, %37 : vector<4x256xf32>
    %39 = tpu.concatenate %7, %11, %15, %19, %22, %26, %30, %34, %38 in 0 : vector<4x256xf32>, vector<4x256xf32>, vector<4x256xf32>, vector<4x256xf32>, vector<4x256xf32>, vector<4x256xf32>, vector<4x256xf32>, vector<4x256xf32>, vector<4x256xf32> -> vector<36x256xf32>
    %c0_12 = arith.constant 0 : index
    %c0_13 = arith.constant 0 : index
    %40 = vector.load %arg2[%c0_12, %c0_13] : memref<8x36xf32, #tpu.memory_space<vmem>>, vector<8x36xf32>
    %cst_14 = arith.constant dense<0.000000e+00> : vector<8x256xf32>
    %41 = tpu.matmul %40, %39, %cst_14 {dimension_numbers = #tpu.dot_dimension_numbers<[1], [0], [0], [1], [0, 0, 1, 1], [], []>} : vector<8x36xf32>, vector<36x256xf32>, vector<8x256xf32> -> vector<8x256xf32>
    %c0_15 = arith.constant 0 : index
    %c0_16 = arith.constant 0 : index
    %c0_17 = arith.constant 0 : index
    %42 = vector.load %arg4[%c0_15, %c0_16, %c0_17] : memref<1x8x256xf32, #tpu.memory_space<vmem>>, vector<1x8x256xf32>
    %43 = vector.shape_cast %42 : vector<1x8x256xf32> to vector<8x256xf32>
    %44 = vector.shape_cast %41 : vector<8x256xf32> to vector<1x8x256xf32>
    tpu.vector_store %arg4[%c0_15, %c0_16, %c0_17], %44 {strides = array<i32>} : memref<1x8x256xf32, #tpu.memory_space<vmem>>, vector<1x8x256xf32>,
    %cst_18 = arith.constant dense<0.000000e+00> : vector<8xf32>
    %45 = vector.multi_reduction <add>, %41, %cst_18 [1] : vector<8x256xf32> to vector<8xf32>
    %46 = vector.shape_cast %45 : vector<8xf32> to vector<8x1xf32>
    %47 = arith.mulf %41, %41 : vector<8x256xf32>
    %cst_19 = arith.constant dense<0.000000e+00> : vector<8xf32>
    %48 = vector.multi_reduction <add>, %47, %cst_19 [1] : vector<8x256xf32> to vector<8xf32>
    %49 = vector.shape_cast %48 : vector<8xf32> to vector<8x1xf32>
    %50 = tpu.concatenate %46, %49 in 1 : vector<8x1xf32>, vector<8x1xf32> -> vector<8x2xf32>
    %c0_20 = arith.constant 0 : index
    %c0_21 = arith.constant 0 : index
    %c0_22 = arith.constant 0 : index
    %51 = vector.load %arg5[%c0_20, %c0_21, %c0_22] : memref<1x8x2xf32, #tpu.memory_space<vmem>>, vector<1x8x2xf32>
    %52 = vector.shape_cast %51 : vector<1x8x2xf32> to vector<8x2xf32>
    %53 = vector.shape_cast %50 : vector<8x2xf32> to vector<1x8x2xf32>
    tpu.vector_store %arg5[%c0_20, %c0_21, %c0_22], %53 {strides = array<i32>} : memref<1x8x2xf32, #tpu.memory_space<vmem>>, vector<1x8x2xf32>,
    return
  }
  func.func @transform_0(%arg0: i32) -> (i32, i32, i32) {
    %c0_i32 = arith.constant 0 : i32
    %c0_i32_0 = arith.constant 0 : i32
    %c0_i32_1 = arith.constant 0 : i32
    return %arg0, %c0_i32, %c0_i32_0 : i32, i32, i32
  }
  func.func @transform_1(%arg0: i32) -> (i32, i32) {
    %c0_i32 = arith.constant 0 : i32
    %c0_i32_0 = arith.constant 0 : i32
    %c0_i32_1 = arith.constant 0 : i32
    return %c0_i32, %c0_i32_0 : i32, i32
  }
  func.func @transform_2(%arg0: i32) -> (i32, i32) {
    %c0_i32 = arith.constant 0 : i32
    %c0_i32_0 = arith.constant 0 : i32
    %c0_i32_1 = arith.constant 0 : i32
    return %c0_i32, %c0_i32_0 : i32, i32
  }
  func.func @transform_3(%arg0: i32) -> (i32, i32, i32) {
    %c0_i32 = arith.constant 0 : i32
    %c0_i32_0 = arith.constant 0 : i32
    %c0_i32_1 = arith.constant 0 : i32
    return %arg0, %c0_i32, %c0_i32_0 : i32, i32, i32
  }
  func.func @transform_4(%arg0: i32) -> (i32, i32, i32) {
    %c0_i32 = arith.constant 0 : i32
    %c0_i32_0 = arith.constant 0 : i32
    %c0_i32_1 = arith.constant 0 : i32
    return %arg0, %c0_i32, %c0_i32_0 : i32, i32, i32
  }
}

</mosaic_0001>

<bundles_post_ra>
// kernel: tpu_custom_call.1
= control target key start
LH: loop header
LB: loop body
LE: loop exit
PB: predicated region body
PF: predicated region fallthrough
CT: control target
= control target key end

     0   :  { %10 = vsyncpa [#allocation3], 0  ;;  %s1183_s0 = inlined_call_operand.hbm [shape: f32[2,4,256], index: 0, kind: input, shape index: {}]   ;;  %s1184_s1 = inlined_call_operand.hbm [shape: f32[8,36], index: 1, kind: input, shape index: {}]   ;;  %s1185_s2 = inlined_call_operand.hbm [shape: f32[9,256], index: 2, kind: input, shape index: {}]   ;;  %s1186_s3 = inlined_call_operand.hbm [shape: f32[2,8,256], index: 3, kind: output, shape index: {0}]   ;;  %s1187_s4 = inlined_call_operand.vmem [shape: f32[2,8,2], index: 4, kind: output, shape index: {1}]  }
   0x1   :  { %12 = vsyncpa [#allocation3 + $0x1], 0 }
   0x2   :  { %13 = vsyncpa [#allocation6], 0 }
   0x3   :  { %14 = vsyncpa [#allocation4], 0 }
   0x4   :  { %16 = vsyncpa [#allocation4 + $0x1], 0  ;;  %s981_s15 = smov 0   ;;  %s983_s16 = smov 0  }
   0x5   :  { %s985_s17 = smov 0   ;;  %s987_s18 = smov 0  }
   0x6 LB: > { %s1002_s19 = sadd.s32 4294967295, %s942_s18   ;;  %s680_s20 = sadd.s32 4294967294, %s942_s18   ;;  %s942_s18 = sphi %s987_s18, %s1197_s18   ;;  %s938_s17 = sphi %s985_s17, %s1196_s17   ;;  %s934_s16 = sphi %s983_s16, %s1195_s16   ;;  %s930_s15 = sphi %s981_s15, %s1194_s15  }
   0x7   : > { %p42_p0 = scmp.ne.s32.totalorder %s934_s16, %s930_s15  ;;  %p43_p1 = scmp.eq.s32.totalorder %s1002_s19, 0 }
   0x8   : > { %p108_p2 = scmp.eq.s32.totalorder %s1002_s19, 1  ;;  %p114_p3 = scmp.eq.s32.totalorder %s680_s20, 1 }
   0x9   : > { %p1011_p4 = por %p43_p1, %p42_p0  ;;  %p681_p5 = scmp.ge.s32.totalorder %s942_s18, 1 }
   0xa   : > { %p1016_p6 = por %p114_p3, %p42_p0  ;;  %p147_p7 = scmp.lt.s32.totalorder %s942_s18, 3 }
   0xb   : > { %s159_s25 = sshll.u32 %s1184_s1, 4  ;;  %s944_s27 = smov [#allocation5]   ;;  %s160_s25 = int_to_ptr.hbm [resolvable:$true] %s159_s25 }
   0xc   : > { %p1024_p8 = pnand %p681_p5, %p147_p7  ;;  %s161_s28 = sshll.u32 %s944_s27, 4  ;;  %s162_s28 = int_to_ptr.vmem [resolvable:$true] %s161_s28 }
   0xd   : > { %s170_s5 = sshll.u32 %s1185_s2, 4  ;;  %s945_s6 = smov [#allocation7]   ;;  %s171_s5 = int_to_ptr.hbm [resolvable:$true] %s170_s5 }
   0xe   : > { %p717_p10 = pneg %p1024_p8  ;;  %s172_s7 = sshll.u32 %s945_s6, 4  ;;  %s173_s7 = int_to_ptr.vmem [resolvable:$true] %s172_s7 }
   0xf   : > { %s946_s8 = smov 256   ;;  %s947_s9 = smov 16  }
  0x10   : > { %p718_p11 = pnand %p717_p10, %p43_p1  ;;  %s1037_s10 = sadd.s32 1, %s942_s18  }
  0x11   : > { %s26_s11 = ssub.s32 %s942_s18, %s1037_s10  ;;  %s29_s12 = sadd.s32 1, %s938_s17 }
  0x12   : > { %720 = dma.hbm_to_vmem [thread:$0]  (!%p718_p11), %s160_s25, 128, %s162_s28, [#allocation6]  }
  0x13   : > { %723 = dma.hbm_to_vmem [thread:$0]  (!%p718_p11), %s171_s5, 512, %s173_s7, [#allocation6], %s946_s8, %s946_s8, %s947_s9  }
  0x14   : > { %p27_p12 = scmp.eq.s32.totalorder %s26_s11, 0  ;;  %p36_p13 = scmp.ne.s32.totalorder %s938_s17, %s934_s16 }
  0x15   : > { %p37_p0 = scmp.eq.s32.totalorder %s942_s18, 0  ;;  %p734_p7 = scmp.lt.s32.totalorder %s942_s18, 2 }
  0x16   : > { %s1046_s13 = scalar_select %p27_p12, %s938_s17, %s29_s12  }
  0x17   : > { %p38_p3 = por %p37_p0, %p36_p13  ;;  %p1050_p5 = por %p108_p2, %p36_p13 }
  0x18   : > { %s186_s20 = sand.u32 1, %s938_s17   ;;  %s703_s24 = sshll.u32 %s942_s18, 3 }
  0x19   : > { %s685_s23 = sshll.u32 %s186_s20, 3  ;;  %s195_s28 = scalar_lea.hbm %s1183_s0, %s703_s24 }
  0x1a   : > { %s190_s29 = scalar_lea.vmem [#allocation2], %s685_s23  ;;  %s197_s5 = sshll.u32 %s195_s28, 4  ;;  %s198_s5 = int_to_ptr.hbm [resolvable:$true] %s197_s5 }
  0x1b   : > { %s199_s30 = sshll.u32 %s190_s29, 4  ;;  %p1060_p10 = pnand %p734_p7, %p38_p3  ;;  %s200_s30 = int_to_ptr.vmem [resolvable:$true] %s199_s30 }
  0x1c   : > { %s187_s7 = scalar_lea.sflag [#allocation3], %s186_s20  ;;  %s842_s8 = sshra.s32 %s198_s5, 4  ;;  %s843_s8 = int_to_ptr.hbm [resolvable:$true] %s842_s8 }
  0x1d   : > { %s844_s9 = scalar_lea.hbm %s843_s8, 8  ;;  %p846_p11 = pneg %p1060_p10 }
  0x1e   : > { %p845_p2 = scmp.ne.s32.totalorder %s843_s8, %s844_s9  ;;  %s849_s23 = scalar_lea.hbm %s1183_s0, 16 }
  0x1f   : > { %p850_p0 = scmp.lt.s32.totalorder %s843_s8, %s1183_s0  ;;  %p851_p3 = scmp.lt.s32.totalorder %s849_s23, %s844_s9 }
  0x20   : > { %p847_p12 = pnand %p846_p11, %p845_p2 }
  0x21   : > { %p852_p7 = por %p851_p3, %p850_p0 }
  0x22   : > { %p848_p13 = pneg %p847_p12 }
  0x24   : > { %p853_p9 = pnand %p852_p7, %p848_p13 }
  0x26   : > { %856 = shalt.err (!%p853_p9)
}
  0x27   : > { %727 = dma.hbm_to_vmem [thread:$0]  (!%p1060_p10), %s198_s5, 128, %s200_s30, %s187_s7  }
  0x28   : > { %208 = sbr.rel (%p1024_p8) target bundleno = 501 (0x1f5), region = 32  ;;  %s1077_s20 = sand.u32 (!%p1024_p8), 1, %s934_s16  }
  0x29   : > { %s689_s27 = sshll.u32 (!%p1024_p8), %s1077_s20, 3  ;;  %s211_s28 = scalar_lea.sflag (!%p1024_p8), [#allocation3], %s1077_s20 }
  0x2a   : > { %s214_s29 = scalar_lea.vmem (!%p1024_p8), [#allocation2], %s689_s27 }
  0x2d   : > { %917 = dma.done.wait (%p1011_p4), %s211_s28, 128  }
  0x2e   : > { %919 = vsyncadd (%p1011_p4), %s211_s28, 4294967168 }
  0x2f   : > { %921 = dma.done.wait (%p43_p1), [#allocation6], 640  }
  0x30   : > { %923 = vsyncadd (%p43_p1), [#allocation6], 4294966656  ;;  %v258_v0 = vld [vmem:[%s214_s29] sm:$0xff]  ;;  %s948_s26 = smov 16   ;;  %s949_s21 = smov 15   ;;  %vm352_vm0 = vcmask 1043456   ;;  %v270_v33 = vlaneseq }
  0x31   : > { %v259_v1 = vmax.f32 %v258_v0, 0.0  ;;  %s950_s30 = smov 1   ;;  %s951_s5 = smov 127   ;;  %v347_v18 = vld [vmem:[#allocation7 + $0x4] ss:$8 sm:$0x3] }
  0x32   : > { %s952_s6 = smov 113   ;;  %s953_s7 = smov 112   ;;  %v349_v19 = vperm.slane %v347_v18, 0  ;;  %v350_v20 = vperm.slane %v347_v18, 1  ;;  %v1098_v34 = vand.u32 127, %v270_v33  ;;  %vm479_vm9 = vcmask 293888  }
  0x33   : > { %261 = vst [vmem:[#allocation1] ss:$2 sm:$0xff] %v259_v1  ;;  %s954_s8 = smov 17   ;;  %s955_s9 = smov 111  }
  0x34   : > { %v351_v22 = vrot.slane %v350_v20, 4  ;;  %v411_v35 = vld [vmem:[#allocation7 + $0x7] ss:$8 sm:$0x3]  ;;  %vm407_vm1 = vcmp.lt.s32.totalorder %v1098_v34, 112  ;;  %vm365_vm2 = vcmp.lt.s32.totalorder %v1098_v34, 127 }
  0x35   : > { %v369_v36 = vld [vmem:[#allocation7 + $0x5] ss:$8 sm:$0x3]  ;;  %v1101_v37 = vld [vmem:[#allocation7 + $0x1] ss:$8 sm:$0x3] }
  0x36   : > { %v353_v23 = vsel %vm352_vm0, %v349_v19, %v351_v22  ;;  %v338_v40 = vld [vmem:[#allocation7 + $0x3] ss:$8 sm:$0x3]  ;;  %v413_v41 = vperm.slane %v411_v35, 0  ;;  %v414_v42 = vperm.slane %v411_v35, 1  ;;  %v371_v43 = vperm.slane %v369_v36, 0 }
  0x37   : > { %v355_v24 = vmul.f32 %v353_v23, %v259_v1  ;;  %v372_v47 = vperm.slane %v369_v36, 1  ;;  %v432_v49 = vld [vmem:[#allocation7 + $0x10] ss:$8 sm:$0x3]  ;;  %v298_v50 = vperm.slane %v1101_v37, 0  ;;  %v299_v51 = vperm.slane %v1101_v37, 1 }
  0x38   : > { %v340_v52 = vperm.slane %v338_v40, 0  ;;  %v390_v53 = vld [vmem:[#allocation7 + $0x6] ss:$8 sm:$0x3]  ;;  %vm334_vm3 = vcmp.lt.s32.totalorder %v1098_v34, 1  ;;  %vm386_vm4 = vcmp.lt.s32.totalorder %v1098_v34, 113 }
  0x39   : > { %vm428_vm5 = vcmp.lt.s32.totalorder %v1098_v34, 111  ;;  %v434_v58 = vperm.slane %v432_v49, 0  ;;  %v435_v59 = vperm.slane %v432_v49, 1  ;;  %v341_v60 = vperm.slane %v338_v40, 1  ;;  %s692_s11 = sshll.u32 %s1077_s20, 4  ;;  %s704_s12 = sshll.u32 %s1002_s19, 4 }
  0x3a   : > { %v262_v2 = vld.sshfl [vmem:[#allocation1] sm:$0xff pattern:$0x75316420]  ;;  %v263_v3 = vld.sshfl [vmem:[#allocation1 + $0x8] sm:$0xff pattern:$0x75316420]  ;;  %s559_s25 = scalar_lea.hbm %s1186_s3, %s704_s12 }
  0x3b   : > { %283 = vst [vmem:[#allocation1] ss:$2 sm:$0xff] %v259_v1  ;;  %v392_v61 = vperm.slane %v390_v53, 0  ;;  %v393_v62 = vperm.slane %v390_v53, 1  ;;  %vm292_vm6 = vcmp.lt.s32.totalorder %v1098_v34, 16  ;;  %vm272_vm7 = vcmp.lt.s32.totalorder %v1098_v34, 17 }
  0x3c   : > { %vm313_vm8 = vcmp.lt.s32.totalorder %v1098_v34, 15  ;;  %s247_s27 = scalar_lea.vmem [#allocation8], %s692_s11  ;;  %s563_s29 = sshll.u32 %s559_s25, 4  ;;  %s564_s29 = int_to_ptr.hbm [resolvable:$true] %s563_s29 }
  0x3d   : > { %s561_s28 = sshll.u32 %s247_s27, 4  ;;  %s562_s28 = int_to_ptr.vmem [resolvable:$true] %s561_s28 }
  0x42   : > { %v284_v4 = vld.sshfl [vmem:[#allocation1] sm:$0xff pattern:$0x75316420]  ;;  %v285_v5 = vld.sshfl [vmem:[#allocation1 + $0x8] sm:$0xff pattern:$0x75316420] }
  0x43   : > { %304 = vst [vmem:[#allocation1] ss:$2 sm:$0xff] %v259_v1  ;;  %288 = vrot.lane.b32.xlu1 %v284_v4, %s948_s26  ;;  %290 = vrot.lane.b32.xlu2 %v285_v5, %s948_s26  ;;  %s544_s26 = scalar_lea.sflag [#allocation4], %s1077_s20 }
  0x4a   : > { %v305_v6 = vld.sshfl [vmem:[#allocation1] sm:$0xff pattern:$0x75316420]  ;;  %v306_v7 = vld.sshfl [vmem:[#allocation1 + $0x8] sm:$0xff pattern:$0x75316420] }
  0x4b   : > { %309 = vrot.lane.b32.xlu0 %v305_v6, %s949_s21  ;;  %325 = vst [vmem:[#allocation1] ss:$2 sm:$0xff] %v259_v1 }
  0x52   : > { %v326_v8 = vld.sshfl [vmem:[#allocation1] sm:$0xff pattern:$0x75316420]  ;;  %v327_v9 = vld.sshfl [vmem:[#allocation1 + $0x8] sm:$0xff pattern:$0x75316420] }
  0x53   : > { %332 = vrot.lane.b32.xlu0 %v327_v9, %s950_s30  ;;  %356 = vst [vmem:[#allocation1] ss:$2 sm:$0xff] %v259_v1  ;;  %330 = vrot.lane.b32.xlu2 %v326_v8, %s950_s30 }
  0x5a   : > { %v357_v10 = vld.sshfl [vmem:[#allocation1] sm:$0xff pattern:$0x75316420]  ;;  %v358_v11 = vld.sshfl [vmem:[#allocation1 + $0x8] sm:$0xff pattern:$0x75316420] }
  0x5b   : > { %377 = vst [vmem:[#allocation1] ss:$2 sm:$0xff] %v259_v1  ;;  %361 = vrot.lane.b32.xlu2 %v357_v10, %s951_s5  ;;  %v275_v10 = vld [vmem:[#allocation7] ss:$8 sm:$0x3] }
  0x62   : > { %v378_v12 = vld.sshfl [vmem:[#allocation1] sm:$0xff pattern:$0x75316420]  ;;  %v379_v13 = vld.sshfl [vmem:[#allocation1 + $0x8] sm:$0xff pattern:$0x75316420] }
  0x63   : > { %382 = vrot.lane.b32.xlu0 %v378_v12, %s952_s6  ;;  %384 = vrot.lane.b32.xlu1 %v379_v13, %s952_s6  ;;  %398 = vst [vmem:[#allocation1] ss:$2 sm:$0xff] %v259_v1 }
  0x64   : > { %363 = vrot.lane.b32.xlu2 %v358_v11, %s951_s5 }
  0x6a   : > { %v399_v14 = vld.sshfl [vmem:[#allocation1] sm:$0xff pattern:$0x75316420]  ;;  %v400_v15 = vld.sshfl [vmem:[#allocation1 + $0x8] sm:$0xff pattern:$0x75316420] }
  0x6b   : > { %403 = vrot.lane.b32.xlu0 %v399_v14, %s953_s7  ;;  %419 = vst [vmem:[#allocation1] ss:$2 sm:$0xff] %v259_v1 }
  0x6c   : > { %266 = vrot.lane.b32.xlu2 %v262_v2, %s954_s8 }
  0x72   : > { %v420_v16 = vld.sshfl [vmem:[#allocation1] sm:$0xff pattern:$0x75316420]  ;;  %v421_v17 = vld.sshfl [vmem:[#allocation1 + $0x8] sm:$0xff pattern:$0x75316420] }
  0x73   : > { %405 = vrot.lane.b32.xlu0 %v400_v15, %s953_s7  ;;  %424 = vrot.lane.b32.xlu1 %v420_v16, %s955_s9  ;;  %453 = vst [vmem:[#allocation1] ss:$2 sm:$0xff] %v355_v24  ;;  %v317_v16 = vld [vmem:[#allocation7 + $0x2] ss:$8 sm:$0x3]  ;;  %s892_s7 = scalar_lea.hbm %s1186_s3, 32 }
  0x7a   : > { %v454_v23 = vld.sshfl [vmem:[#allocation1] sm:$0xff pattern:$0x75316420]  ;;  %v455_v24 = vld.sshfl [vmem:[#allocation1 + $0x8] sm:$0xff pattern:$0x75316420] }
  0x7b   : > { %268 = vrot.lane.b32.xlu0 %v263_v3, %s954_s8  ;;  %426 = vrot.lane.b32.xlu1 %v421_v17, %s955_s9 }
  0x83   : > { %311 = vrot.lane.b32.xlu1 %v306_v7, %s949_s21  ;;  %s886_s21 = sshra.s32 %s564_s29, 4  ;;  %s887_s21 = int_to_ptr.hbm [resolvable:$true] %s886_s21 }
  0x84   : > { %s888_s30 = scalar_lea.hbm %s887_s21, 16  ;;  %p893_p9 = scmp.lt.s32.totalorder %s887_s21, %s1186_s3 }
  0x85   : > { %p889_p1 = scmp.ne.s32.totalorder %s887_s21, %s888_s30  ;;  %p894_p10 = scmp.lt.s32.totalorder %s892_s7, %s888_s30 }
  0x87   : > { %p890_p4 = pnand %p889_p1, %p1050_p5  ;;  %p895_p2 = por %p894_p10, %p893_p9 }
  0x89   : > { %p891_p8 = pneg %p890_p4 }
  0x8b   : > { %p896_p11 = pnand %p895_p2, %p891_p8 }
  0x9d   : > { %v1094_v25 = vpop.permute.xlu2 %290 }
  0xad   : > { %v331_v28 = vpop.permute.xlu2 %330 }
  0xb5   : > { %v1096_v27 = vpop.permute.xlu1 %288  ;;  %v362_v31 = vpop.permute.xlu2 %361 }
  0xb6   : > { %v293_v17 = vsel %vm292_vm6, %v1096_v27, %v1094_v25  ;;  %v294_v18 = vsel %vm292_vm6, %v1094_v25, %v1096_v27  ;;  %v319_v25 = vperm.slane %v317_v16, 0  ;;  %v320_v27 = vperm.slane %v317_v16, 1 }
  0xb7   : > { %v302_v37 = vmul.f32 %v298_v50, %v294_v18 }
  0xbd   : > { %v1091_v21 = vpop.permute.xlu0 %309 }
  0xbe   : > { %v364_v44 = vpop.permute.xlu2 %363 }
  0xbf   : > { %v366_v48 = vsel %vm365_vm2, %v362_v31, %v364_v44  ;;  %v367_v54 = vsel %vm365_vm2, %v364_v44, %v362_v31  ;;  %v278_v31 = vperm.slane %v275_v10, 1 }
  0xc0   : > { %v375_v57 = vmul.f32 %v371_v43, %v366_v48  ;;  %v376_v63 = vmul.f32 %v372_v47, %v367_v54  ;;  %v442_v47 = vrot.slane %v302_v37, 4 }
  0xc2   : > { %v460_v9 = vrot.slane %v375_v57, 4  ;;  %v461_v15 = vrot.slane %v376_v63, 4 }
  0xc4   : > { %v474_v35 = vsel %vm352_vm0, %v454_v23, %v460_v9  ;;  %v475_v36 = vsel %vm352_vm0, %v455_v24, %v461_v15 }
  0xc5   : > { %v333_v26 = vpop.permute.xlu0 %332 }
  0xc6   : > { %v336_v0 = vsel %vm334_vm3, %v333_v26, %v331_v28  ;;  %v335_v8 = vsel %vm334_vm3, %v331_v28, %v333_v26  ;;  %v267_v20 = vpop.permute.xlu2 %266  ;;  %v277_v28 = vperm.slane %v275_v10, 0 }
  0xc7   : > { %v344_v19 = vmul.f32 %v340_v52, %v336_v0  ;;  %v345_v26 = vmul.f32 %v341_v60, %v335_v8 }
  0xc9   : > { %v448_v40 = vrot.slane %v344_v19, 4 }
  0xd5   : > { %v383_v29 = vpop.permute.xlu0 %382  ;;  %v385_v30 = vpop.permute.xlu1 %384 }
  0xd6   : > { %v387_v1 = vsel %vm386_vm4, %v383_v29, %v385_v30  ;;  %v388_v2 = vsel %vm386_vm4, %v385_v30, %v383_v29 }
  0xd7   : > { %v396_v13 = vmul.f32 %v392_v61, %v387_v1  ;;  %v397_v14 = vmul.f32 %v393_v62, %v388_v2 }
  0xdd   : > { %v404_v32 = vpop.permute.xlu0 %403 }
  0xe5   : > { %v406_v38 = vpop.permute.xlu0 %405  ;;  %v425_v39 = vpop.permute.xlu1 %424 }
  0xe6   : > { %v408_v45 = vsel %vm407_vm1, %v404_v32, %v406_v38  ;;  %v409_v46 = vsel %vm407_vm1, %v406_v38, %v404_v32  ;;  %v303_v38 = vmul.f32 %v299_v51, %v293_v17  ;;  %v478_v51 = vld [vmem:[#allocation5] sm:$0xff] }
  0xe7   : > { %v417_v55 = vmul.f32 %v413_v41, %v408_v45  ;;  %v418_v56 = vmul.f32 %v414_v42, %v409_v46  ;;  %v449_v41 = vrot.slane %v345_v26, 4 }
  0xe8   : > { %v443_v48 = vrot.slane %v303_v38, 4 }
  0xe9   : > { %v466_v4 = vrot.slane %v417_v55, 4  ;;  %v467_v5 = vrot.slane %v418_v56, 4 }
  0xeb   : > { %v476_v29 = vsel %vm352_vm0, %v396_v13, %v466_v4  ;;  %v477_v30 = vsel %vm352_vm0, %v397_v14, %v467_v5 }
  0xed   : > { %v427_v3 = vpop.permute.xlu1 %426  ;;  %v269_v22 = vpop.permute.xlu0 %268 }
  0xee   : > { %v429_v6 = vsel %vm428_vm5, %v425_v39, %v427_v3  ;;  %v430_v7 = vsel %vm428_vm5, %v427_v3, %v425_v39  ;;  %v273_v32 = vsel %vm272_vm7, %v267_v20, %v269_v22  ;;  %v274_v33 = vsel %vm272_vm7, %v269_v22, %v267_v20 }
  0xef   : > { %v438_v11 = vmul.f32 %v434_v58, %v429_v6  ;;  %v439_v12 = vmul.f32 %v435_v59, %v430_v7  ;;  %v281_v44 = vmul.f32 %v277_v28, %v274_v33  ;;  %v282_v45 = vmul.f32 %v278_v31, %v273_v32 }
  0xf1   : > { %694 = vmatpush.msk.msra.mxu0 %vm352_vm0, %v438_v11  ;;  %696 = vmatpush.msk.msra.mxu1 %vm352_vm0, %v439_v12  ;;  %v470_v52 = vsel %vm352_vm0, %v281_v44, %v442_v47 }
  0xf3   : > { %501 = vmatpush.msra.mxu0 %v476_v29  ;;  %521 = vmatpush.msra.mxu1 %v477_v30 }
  0xf5   : > { %v312_v39 = vpop.permute.xlu1 %311  ;;  %502 = vmatpush.msra.mxu0 %v474_v35  ;;  %522 = vmatpush.msra.mxu1 %v475_v36 }
  0xf6   : > { %v314_v42 = vsel %vm313_vm8, %v1091_v21, %v312_v39  ;;  %v315_v43 = vsel %vm313_vm8, %v312_v39, %v1091_v21  ;;  %v471_v21 = vsel %vm352_vm0, %v282_v45, %v443_v48 }
  0xf7   : > { %v323_v46 = vmul.f32 %v319_v25, %v315_v43  ;;  %v324_v34 = vmul.f32 %v320_v27, %v314_v42 }
  0xf9   : > { %v472_v49 = vsel %vm352_vm0, %v323_v46, %v448_v40  ;;  %v473_v50 = vsel %vm352_vm0, %v324_v34, %v449_v41 }
  0xfa   : > { %503 = vmatpush.msra.mxu0 %v472_v49  ;;  %523 = vmatpush.msra.mxu1 %v473_v50 }
  0xfc   : > { %504 = vmatpush.msra.mxu0 %v470_v52  ;;  %524 = vmatpush.msra.mxu1 %v471_v21 }
  0xfd   : > { %695 = vmatmul.msk.f32.vlgmr.msra.gmra.mxu0 %vm479_vm9, %v478_v51  ;;  %697 = vmatmul.msk.f32.vlgmr.msra.gmra.mxu1 %vm479_vm9, %v478_v51 }
 0x17a   : > { %v506_v53 = vpop.f32.mrf.mxu0  ;;  %v526_v54 = vpop.f32.mrf.mxu1 }
 0x17b   : > { %529 = vst [vmem:[%s247_s27] sm:$0xff] %v506_v53  ;;  %v534_v55 = vmul.f32 %v506_v53, %v506_v53  ;;  %v535_v56 = vmul.f32 %v526_v54, %v526_v54  ;;  %v531_v57 = vadd.f32 %v526_v54, %v506_v53 }
 0x17c   : > { %530 = vst [vmem:[%s247_s27 + $0x8] sm:$0xff] %v526_v54 }
 0x17d   : > { %532 = vadd.xlane.f32.xlu1 %v531_v57  ;;  %v536_v58 = vadd.f32 %v535_v56, %v534_v55 }
 0x17e   : > { %899 = shalt.err (!%p896_p11)
}
 0x17f   : > { %715 = dma.vmem_to_hbm [thread:$0]  (%p1050_p5), %s562_s28, 256, %s564_s29, %s544_s26   ;;  %537 = vadd.xlane.f32.xlu2 %v536_v58  ;;  %vm539_vm10 = vcmask 7168   ;;  %vm541_vm11 = vcmask 15360  }
 0x180   : > { %p254_p12 = scmp.lt.s32.totalorder %s1002_s19, 1 }
 0x182   : > { %s1199_s19 = smov (!%p254_p12, %s1002_s19), 1 }
 0x183   : > { %s693_s20 = sshll.u32 %s1199_s19, 3 }
 0x184   : > { %s257_s23 = scalar_lea.vmem %s1187_s4, %s693_s20 }
 0x1f0   : > { %v533_v59 = vpop.xlane.xlu1 %532 }
 0x1f2   : > { %v538_v60 = vpop.xlane.xlu2 %537 }
 0x1f3   : > { %v540_v61 = vsel %vm539_vm10, %v533_v59, %v538_v60 }
 0x1f4   : > { %542 = vst.msk [vmem:[%s257_s23] sm:$0xff] %vm541_vm11, %v540_v61 }
 0x1f5 PF: > { %s578_s14 = sand.u32 1, %s930_s15   ;;  %p1193_p5 = scmp.ge.s32.totalorder %s942_s18, 2 }
 0x1f6   : > { %s579_s19 = scalar_lea.sflag [#allocation4], %s578_s14 }
 0x1f7   : > { %p729_p13 = pnand %p1193_p5, %p1016_p6 }
 0x1f9   : > { %p730_p0 = pneg %p729_p13 }
 0x1fb   : > { %925 = dma.done.wait (%p730_p0), %s579_s19, 256  }
 0x1fc   : > { %927 = vsyncadd (%p730_p0), %s579_s19, 4294967040  ;;  %p19_p3 = scmp.ge.s32.totalorder %s1037_s10, 4   ;;  %s1194_s15 = smov %s934_s16 }
 0x1fd   : > { %s1195_s16 = smov %s938_s17  ;;  %s1196_s17 = smov %s1046_s13 }
 0x1fe   : > { %s1197_s18 = smov %s1037_s10  ;;  %21 = sbr.rel (!%p19_p3) target bundleno = 6 (0x6), region = 105 }
 0x203   :  { %592 = vsyncpa [#allocation3], 1 }
 0x204   :  { %594 = vsyncpa [#allocation3 + $0x1], 1 }
 0x205   :  { %595 = vsyncpa [#allocation6], 1 }
 0x206   :  { %596 = vsyncpa [#allocation4], 1 }
 0x207   :  { %598 = vsyncpa [#allocation4 + $0x1], 1 }

</bundles_post_ra>
